<compile_context>
chip_gen: v7x
topology: tpu7x:2x2x1
jax: 0.10.0
libtpu: 0.0.40
codegen_flags: <defaults>
</compile_context>

<pallas_src>
import functools

import jax
import jax.numpy as jnp
from jax.experimental import pallas as pl
from jax.experimental.pallas import tpu as pltpu


def _round_up(x, m):
    return ((x + m - 1) // m) * m


def _cdiv(a, b):
    return -(-a // b)


# -----------------------------------------------------------------------------
# Kernels.  Grid = (batch tiles [parallel], fused-hidden tiles [arbitrary]).
# -----------------------------------------------------------------------------
def _ensemble_kernel_f32out(x_ref, w1_ref, b1_ref, w2_ref, b2_ref, o_ref, *,
                            inv_m):
    """f32 output: accumulate directly into the resident output block."""
    j = pl.program_id(1)

    # Matmul-1 on the MXU (f32 accumulate); bias + ReLU stay f32 on the VPU.
    h = jnp.dot(x_ref[...], w1_ref[...], preferred_element_type=jnp.float32)
    h = jnp.maximum(h + b1_ref[...], 0.0)
    # Matmul-2 contracts the fused (member, hidden) axis; the sum over members
    # falls out of this K reduction.  NOTE: on the bf16 compute path h is
    # rounded to bf16 here (documented extra error source vs f32 reference).
    p = jnp.dot(h.astype(w2_ref.dtype), w2_ref[...],
                preferred_element_type=jnp.float32)

    @pl.when(j == 0)
    def _():
        o_ref[...] = p

    @pl.when(j > 0)
    def _():
        o_ref[...] += p

    @pl.when(j == pl.num_programs(1) - 1)
    def _():
        # mean over members = sum / M, plus the precomputed mean(b2).
        o_ref[...] = o_ref[...] * inv_m + b2_ref[...]


def _ensemble_kernel_accout(x_ref, w1_ref, b1_ref, w2_ref, b2_ref, o_ref,
                            acc_ref, *, inv_m):
    """Narrow output dtypes: f32 scratch accumulator, cast at the last step."""
    j = pl.program_id(1)

    @pl.when(j == 0)
    def _():
        acc_ref[...] = jnp.zeros_like(acc_ref)

    h = jnp.dot(x_ref[...], w1_ref[...], preferred_element_type=jnp.float32)
    h = jnp.maximum(h + b1_ref[...], 0.0)
    acc_ref[...] += jnp.dot(h.astype(w2_ref.dtype), w2_ref[...],
                            preferred_element_type=jnp.float32)

    @pl.when(j == pl.num_programs(1) - 1)
    def _():
        o_ref[...] = (acc_ref[...] * inv_m + b2_ref[...]).astype(o_ref.dtype)


# -----------------------------------------------------------------------------
# Generation-aware tile plan.
# -----------------------------------------------------------------------------
def _plan_tiles(D, MH, O, comp_isize, batch_tile):
    vmem_cap = 64 << 20                       # conservative default (v7x 64 MiB)
    try:
        info = pltpu.get_tpu_info()
        vmem_cap = int(getattr(info, "vmem_capacity_bytes", vmem_cap) or vmem_cap)
    except Exception:
        pass
    budget = int(vmem_cap * 0.65)             # plan to ~65% of physical VMEM

    # 256 matches the v6e/v7x 256-wide MXU and is a legal 128-multiple on v5e.
    align = 256 if MH > 128 else 128
    Op = _round_up(O, 128)
    TB_cap = max(16, _round_up(min(batch_tile, 1024), 16))

    def footprint(tb, tmh):
        pad = lambda r, c, isz: _round_up(max(r, 1), 8) * _round_up(c, 128) * isz
        fp = 0
        fp += 2 * pad(tb, D, comp_isize)              # x tile (double-buffered)
        fp += 2 * pad(D, tmh, comp_isize)             # W1_cat chunk
        fp += 2 * pad(1, tmh, 4)                      # b1_cat chunk (f32)
        fp += 2 * pad(tmh, Op, comp_isize)            # W2_stk chunk
        fp += 2 * pad(1, Op, 4)                       # mean(b2)
        fp += 2 * pad(tb, Op, 4)                      # output tile
        fp += pad(tb, Op, 4)                          # acc scratch (worst case)
        fp += pad(tb, tmh, 4) + pad(tb, tmh, comp_isize)   # h (f32 + cast)
        return fp

    def pick_tmh(tb):
        # Prefer full weight residency (n_mh == 1): weights are then fetched
        # from HBM exactly once for the whole kernel.  Otherwise split with
        # minimal padding: TMH = round_up(MH / n, align).
        n = 1
        while True:
            tmh = _round_up(_cdiv(MH, n), align)
            if footprint(tb, tmh) <= budget or tmh <= align:
                return tmh
            n += 1

    while True:
        TMH = pick_tmh(TB_cap)
        if footprint(TB_cap, TMH) <= budget or TB_cap <= 16:
            break
        TB_cap = max(16, TB_cap // 2)         # last resort: shrink batch tile

    n_mh = _cdiv(MH, TMH)
    MHp = n_mh * TMH
    vmem_limit = int(min(vmem_cap * 9 // 10,
                         max(footprint(TB_cap, TMH) * 13 // 10, 32 << 20)))
    return dict(TB_cap=TB_cap, TMH=TMH, n_mh=n_mh, MHp=MHp, Op=Op,
                vmem_limit=vmem_limit)


# -----------------------------------------------------------------------------
# One-time weight packing (hoisted out of the per-call forward).
# -----------------------------------------------------------------------------
def pack_ensemble_weights(w1, b1, w2, b2, *, compute_dtype=jnp.float32,
                          batch_tile=512):
    """w1: [M, D, H]; b1: [M, H]; w2: [M, H, O]; b2: [M, O]."""
    compute_dtype = jnp.dtype(compute_dtype)
    M, D, H = w1.shape
    O = w2.shape[-1]
    MH = M * H
    plan = _plan_tiles(D, MH, O, compute_dtype.itemsize, batch_tile)
    MHp, Op = plan["MHp"], plan["Op"]

    w1_cat = jnp.transpose(w1, (1, 0, 2)).reshape(D, MH)          # [D, M*H]
    b1_cat = b1.reshape(1, MH)                                    # [1, M*H]
    w2_stk = w2.reshape(MH, O)                                    # [M*H, O]
    b2_mean = jnp.mean(b2.astype(jnp.float32), axis=0, keepdims=True)  # [1, O]

    # Zero padding is semantically inert: padded hidden columns have bias 0
    # -> relu(0) = 0, padded W2 rows are 0, padded output lanes are sliced off.
    w1_cat = jnp.pad(w1_cat, ((0, 0), (0, MHp - MH))).astype(compute_dtype)
    b1_cat = jnp.pad(b1_cat, ((0, 0), (0, MHp - MH))).astype(jnp.float32)
    w2_stk = jnp.pad(w2_stk, ((0, MHp - MH), (0, Op - O))).astype(compute_dtype)
    b2_mean = jnp.pad(b2_mean, ((0, 0), (0, Op - O))).astype(jnp.float32)

    # TODO(synk): v7x-only fp8 weight path (per-output-channel scales folded
    # into b1 / final epilogue) would halve weight DMA bytes and ~2x MXU rate.
    return dict(w1_cat=w1_cat, b1_cat=b1_cat, w2_stk=w2_stk, b2_mean=b2_mean,
                plan=plan, M=M, D=D, O=O, compute_dtype=compute_dtype)


# -----------------------------------------------------------------------------
# Forward.
# -----------------------------------------------------------------------------
def ensemble_dnn_forward_packed(x, packed):
    plan = packed["plan"]
    B, D = x.shape
    assert D == packed["D"], "feature dim mismatch with packed weights"
    M, O = packed["M"], packed["O"]
    Op, TMH, MHp, n_mh = plan["Op"], plan["TMH"], plan["MHp"], plan["n_mh"]
    compute_dtype = packed["compute_dtype"]
    out_dtype = x.dtype

    # Batch tiling: full-dim blocks are always legal; tiled TB is a multiple
    # of 16 so bf16 sublane packing / the (8,128) rule are respected.
    TB = B if B <= plan["TB_cap"] else plan["TB_cap"]
    n_b = _cdiv(B, TB)
    # Megacore (v7x): give both TensorCores batch tiles when the batch is big
    # enough (no-op on single-TC v5e/v6e).
    if n_b == 1 and B >= 256:
        TB = _round_up(_cdiv(B, 2), 16)
        n_b = _cdiv(B, TB)
    # NOTE: a partial last batch tile (B % TB != 0) computes on padded rows
    # that are then mask-stored -- correct by construction.

    x_c = x.astype(compute_dtype)
    comp_isize = compute_dtype.itemsize
    out_isize = jnp.dtype(out_dtype).itemsize

    # Weights are fetched once when fully resident (constant index maps,
    # n_mh == 1); otherwise re-streamed once per batch tile.
    weight_bytes = (packed["w1_cat"].size + packed["w2_stk"].size) * comp_isize
    weight_fetches = 1 if n_mh == 1 else n_b
    cost = pl.CostEstimate(
        flops=2 * B * (D * MHp + MHp * Op),
        transcendentals=0,
        bytes_accessed=(x_c.size * comp_isize
                        + weight_fetches * weight_bytes
                        + (packed["b1_cat"].size + packed["b2_mean"].size) * 4
                        + B * Op * out_isize),
    )

    inv_m = 1.0 / M
    if jnp.dtype(out_dtype) == jnp.dtype(jnp.float32):
        kernel = functools.partial(_ensemble_kernel_f32out, inv_m=inv_m)
        scratch_shapes = []
    else:
        kernel = functools.partial(_ensemble_kernel_accout, inv_m=inv_m)
        scratch_shapes = [pltpu.VMEM((TB, Op), jnp.float32)]

    out_padded = pl.pallas_call(
        kernel,
        out_shape=jax.ShapeDtypeStruct((B, Op), out_dtype),
        grid_spec=pltpu.PrefetchScalarGridSpec(
            num_scalar_prefetch=0,
            grid=(n_b, n_mh),
            in_specs=[
                pl.BlockSpec((TB, D), lambda i, j: (i, 0)),     # x batch tile
                pl.BlockSpec((D, TMH), lambda i, j: (0, j)),    # W1_cat chunk
                pl.BlockSpec((1, TMH), lambda i, j: (0, j)),    # b1_cat chunk
                pl.BlockSpec((TMH, Op), lambda i, j: (j, 0)),   # W2_stk chunk
                pl.BlockSpec((1, Op), lambda i, j: (0, 0)),     # mean(b2)
            ],
            out_specs=pl.BlockSpec((TB, Op), lambda i, j: (i, 0)),
            scratch_shapes=scratch_shapes,
        ),
        compiler_params=pltpu.CompilerParams(
            dimension_semantics=("parallel", "arbitrary"),
            vmem_limit_bytes=plan["vmem_limit"],
        ),
        cost_estimate=cost,
    )(x_c, packed["w1_cat"], packed["b1_cat"], packed["w2_stk"],
      packed["b2_mean"])

    return out_padded[:, :O]


def ensemble_dnn_forward(x, w1, b1, w2, b2, *, compute_dtype=None,
                         batch_tile=512):
    """Convenience wrapper: packs weights then runs the forward.  For repeated
    inference call pack_ensemble_weights once and reuse the packed dict."""
    if compute_dtype is None:
        compute_dtype = x.dtype
    packed = pack_ensemble_weights(w1, b1, w2, b2, compute_dtype=compute_dtype,
                                   batch_tile=batch_tile)
    return ensemble_dnn_forward_packed(x, packed)


def ensemble_dnn_reference(x, w1, b1, w2, b2):
    """Pure-JAX reference mirroring the PyTorch forward (stack + mean)."""
    outs = []
    for m in range(w1.shape[0]):
        h = jnp.maximum(x @ w1[m] + b1[m], 0.0)
        outs.append(h @ w2[m] + b2[m])
    return jnp.mean(jnp.stack(outs), axis=0)


if __name__ == "__main__":
    # Small shapes: batch=8, in-features=32, hidden=64, out=16, ensemble of 4.
    B, D, H, O, M = 8, 32, 64, 16, 4

    key = jax.random.PRNGKey(0)
    kx, k1, k2, k3, k4 = jax.random.split(key, 5)

    x = jax.random.normal(kx, (B, D), dtype=jnp.float32)
    w1 = jax.random.normal(k1, (M, D, H), dtype=jnp.float32) * 0.1
    b1 = jax.random.normal(k2, (M, H), dtype=jnp.float32) * 0.1
    w2 = jax.random.normal(k3, (M, H, O), dtype=jnp.float32) * 0.1
    b2 = jax.random.normal(k4, (M, O), dtype=jnp.float32) * 0.1

    ref = ensemble_dnn_reference(x, w1, b1, w2, b2)

    # f32 path: pack once, run on packed weights (matches PyTorch numerics).
    packed_f32 = pack_ensemble_weights(w1, b1, w2, b2, compute_dtype=jnp.float32)
    out_f32 = jax.block_until_ready(ensemble_dnn_forward_packed(x, packed_f32))
    assert out_f32.shape == (B, O)
    assert jnp.allclose(out_f32, ref, atol=1e-5, rtol=1e-5), "f32 mismatch"

    # bf16 MXU path (f32 in/out, bf16 weights + matmuls) -- recommended mode.
    packed_bf16 = pack_ensemble_weights(w1, b1, w2, b2, compute_dtype=jnp.bfloat16)
    out_bf16 = jax.block_until_ready(ensemble_dnn_forward_packed(x, packed_bf16))
    assert out_bf16.shape == (B, O)
    assert jnp.allclose(out_bf16.astype(jnp.float32), ref,
                        atol=2e-2, rtol=2e-2), "bf16 mismatch"

    # bf16 in/out path: exercises the scratch-accumulator kernel (narrow out).
    out_bf16_io = jax.block_until_ready(
        ensemble_dnn_forward_packed(x.astype(jnp.bfloat16), packed_bf16))
    assert out_bf16_io.shape == (B, O)
    assert out_bf16_io.dtype == jnp.bfloat16
    assert jnp.allclose(out_bf16_io.astype(jnp.float32), ref,
                        atol=6e-2, rtol=6e-2), "bf16 io mismatch"

    print("KERNEL_OK")
</pallas_src>

<mosaic_0001>
module attributes {stable_mosaic.version = 11 : i64} {
  func.func @_ensemble_kernel_f32out(%arg0: i32, %arg1: i32, %arg2: memref<8x32xf32, #tpu.memory_space<vmem>>, %arg3: memref<32x256xf32, #tpu.memory_space<vmem>>, %arg4: memref<1x256xf32, #tpu.memory_space<vmem>>, %arg5: memref<256x128xf32, #tpu.memory_space<vmem>>, %arg6: memref<1x128xf32, #tpu.memory_space<vmem>>, %arg7: memref<8x128xf32, #tpu.memory_space<vmem>>) attributes {dimension_semantics = [#tpu.dimension_semantics<parallel>, #tpu.dimension_semantics<arbitrary>], iteration_bounds = array<i64: 1, 1>, scalar_prefetch = 0 : i64, scratch_operands = 0 : i64, tpu.core_type = #tpu.core_type<tc>, window_params = [{transform_indices = @transform_0, window_bounds = array<i64: 8, 32>}, {transform_indices = @transform_1, window_bounds = array<i64: 32, 256>}, {transform_indices = @transform_2, window_bounds = array<i64: 1, 256>}, {transform_indices = @transform_3, window_bounds = array<i64: 256, 128>}, {pipeline_mode = #tpu.pipeline_mode<synchronous>, transform_indices = @transform_4, window_bounds = array<i64: 1, 128>}, {transform_indices = @transform_5, window_bounds = array<i64: 8, 128>}]} {
    %c0 = arith.constant 0 : index
    %c0_0 = arith.constant 0 : index
    %0 = vector.load %arg2[%c0, %c0_0] : memref<8x32xf32, #tpu.memory_space<vmem>>, vector<8x32xf32>
    %c0_1 = arith.constant 0 : index
    %c0_2 = arith.constant 0 : index
    %1 = vector.load %arg3[%c0_1, %c0_2] : memref<32x256xf32, #tpu.memory_space<vmem>>, vector<32x256xf32>
    %cst = arith.constant dense<0.000000e+00> : vector<8x256xf32>
    %2 = tpu.matmul %0, %1, %cst {dimension_numbers = #tpu.dot_dimension_numbers<[1], [0], [0], [1], [0, 0, 1, 1], [], []>} : vector<8x32xf32>, vector<32x256xf32>, vector<8x256xf32> -> vector<8x256xf32>
    %c0_3 = arith.constant 0 : index
    %c0_4 = arith.constant 0 : index
    %3 = vector.load %arg4[%c0_3, %c0_4] : memref<1x256xf32, #tpu.memory_space<vmem>>, vector<1x256xf32>
    %4 = vector.broadcast %3 : vector<1x256xf32> to vector<8x256xf32>
    %5 = arith.addf %2, %4 : vector<8x256xf32>
    %cst_5 = arith.constant 0.000000e+00 : f32
    %6 = vector.broadcast %cst_5 : f32 to vector<8x256xf32>
    %7 = arith.maximumf %5, %6 : vector<8x256xf32>
    %c0_6 = arith.constant 0 : index
    %c0_7 = arith.constant 0 : index
    %8 = vector.load %arg5[%c0_6, %c0_7] : memref<256x128xf32, #tpu.memory_space<vmem>>, vector<256x128xf32>
    %cst_8 = arith.constant dense<0.000000e+00> : vector<8x128xf32>
    %9 = tpu.matmul %7, %8, %cst_8 {dimension_numbers = #tpu.dot_dimension_numbers<[1], [0], [0], [1], [0, 0, 1, 1], [], []>} : vector<8x256xf32>, vector<256x128xf32>, vector<8x128xf32> -> vector<8x128xf32>
    %c0_i32 = arith.constant 0 : i32
    %10 = arith.cmpi eq, %arg1, %c0_i32 : i32
    %11 = arith.extui %10 : i1 to i32
    %c0_i32_9 = arith.constant 0 : i32
    %12 = arith.cmpi ne, %11, %c0_i32_9 : i32
    scf.if %12 {
      %c0_14 = arith.constant 0 : index
      %c0_15 = arith.constant 0 : index
      %19 = vector.load %arg7[%c0_14, %c0_15] : memref<8x128xf32, #tpu.memory_space<vmem>>, vector<8x128xf32>
      tpu.vector_store %arg7[%c0_14, %c0_15], %9 {strides = array<i32>} : memref<8x128xf32, #tpu.memory_space<vmem>>, vector<8x128xf32>,
    } else {
    }
    %c0_i32_10 = arith.constant 0 : i32
    %13 = arith.cmpi sgt, %arg1, %c0_i32_10 : i32
    %14 = arith.extui %13 : i1 to i32
    %c0_i32_11 = arith.constant 0 : i32
    %15 = arith.cmpi ne, %14, %c0_i32_11 : i32
    scf.if %15 {
      %c0_14 = arith.constant 0 : index
      %c0_15 = arith.constant 0 : index
      %19 = vector.load %arg7[%c0_14, %c0_15] : memref<8x128xf32, #tpu.memory_space<vmem>>, vector<8x128xf32>
      %20 = arith.addf %19, %9 : vector<8x128xf32>
      %c0_16 = arith.constant 0 : index
      %c0_17 = arith.constant 0 : index
      %21 = vector.load %arg7[%c0_16, %c0_17] : memref<8x128xf32, #tpu.memory_space<vmem>>, vector<8x128xf32>
      tpu.vector_store %arg7[%c0_16, %c0_17], %20 {strides = array<i32>} : memref<8x128xf32, #tpu.memory_space<vmem>>, vector<8x128xf32>,
    } else {
    }
    %c0_i32_12 = arith.constant 0 : i32
    %16 = arith.cmpi eq, %arg1, %c0_i32_12 : i32
    %17 = arith.extui %16 : i1 to i32
    %c0_i32_13 = arith.constant 0 : i32
    %18 = arith.cmpi ne, %17, %c0_i32_13 : i32
    scf.if %18 {
      %c0_14 = arith.constant 0 : index
      %c0_15 = arith.constant 0 : index
      %19 = vector.load %arg7[%c0_14, %c0_15] : memref<8x128xf32, #tpu.memory_space<vmem>>, vector<8x128xf32>
      %cst_16 = arith.constant 2.500000e-01 : f32
      %20 = vector.broadcast %cst_16 : f32 to vector<8x128xf32>
      %21 = arith.mulf %19, %20 : vector<8x128xf32>
      %c0_17 = arith.constant 0 : index
      %c0_18 = arith.constant 0 : index
      %22 = vector.load %arg6[%c0_17, %c0_18] : memref<1x128xf32, #tpu.memory_space<vmem>>, vector<1x128xf32>
      %23 = vector.broadcast %22 : vector<1x128xf32> to vector<8x128xf32>
      %24 = arith.addf %21, %23 : vector<8x128xf32>
      %c0_19 = arith.constant 0 : index
      %c0_20 = arith.constant 0 : index
      %25 = vector.load %arg7[%c0_19, %c0_20] : memref<8x128xf32, #tpu.memory_space<vmem>>, vector<8x128xf32>
      tpu.vector_store %arg7[%c0_19, %c0_20], %24 {strides = array<i32>} : memref<8x128xf32, #tpu.memory_space<vmem>>, vector<8x128xf32>,
    } else {
    }
    return
  }
  func.func @transform_0(%arg0: i32, %arg1: i32) -> (i32, i32) {
    %c0_i32 = arith.constant 0 : i32
    %c0_i32_0 = arith.constant 0 : i32
    return %arg0, %c0_i32 : i32, i32
  }
  func.func @transform_1(%arg0: i32, %arg1: i32) -> (i32, i32) {
    %c0_i32 = arith.constant 0 : i32
    %c0_i32_0 = arith.constant 0 : i32
    return %c0_i32, %arg1 : i32, i32
  }
  func.func @transform_2(%arg0: i32, %arg1: i32) -> (i32, i32) {
    %c0_i32 = arith.constant 0 : i32
    %c0_i32_0 = arith.constant 0 : i32
    return %c0_i32, %arg1 : i32, i32
  }
  func.func @transform_3(%arg0: i32, %arg1: i32) -> (i32, i32) {
    %c0_i32 = arith.constant 0 : i32
    %c0_i32_0 = arith.constant 0 : i32
    return %arg1, %c0_i32 : i32, i32
  }
  func.func @transform_4(%arg0: i32, %arg1: i32) -> (i32, i32) {
    %c0_i32 = arith.constant 0 : i32
    %c0_i32_0 = arith.constant 0 : i32
    %c0_i32_1 = arith.constant 0 : i32
    return %c0_i32, %c0_i32_0 : i32, i32
  }
  func.func @transform_5(%arg0: i32, %arg1: i32) -> (i32, i32) {
    %c0_i32 = arith.constant 0 : i32
    %c0_i32_0 = arith.constant 0 : i32
    return %arg0, %c0_i32 : i32, i32
  }
}

</mosaic_0001>

<bundles_post_ra>
// kernel: tpu_custom_call.1
= control target key start
LH: loop header
LB: loop body
LE: loop exit
PB: predicated region body
PF: predicated region fallthrough
CT: control target
= control target key end

     0   :  { %10 = vsyncpa [#allocation3], 0  ;;  %s575_s0 = inlined_call_operand.hbm [shape: f32[8,32], index: 0, kind: input, shape index: {}]   ;;  %s576_s1 = inlined_call_operand.hbm [shape: f32[32,256], index: 1, kind: input, shape index: {}]   ;;  %s577_s2 = inlined_call_operand.vmem [shape: f32[1,256], index: 2, kind: input, shape index: {}]   ;;  %s578_s3 = inlined_call_operand.hbm [shape: f32[256,128], index: 3, kind: input, shape index: {}]   ;;  %s579_s4 = inlined_call_operand.vmem [shape: f32[1,128], index: 4, kind: input, shape index: {}]   ;;  %s580_s5 = inlined_call_operand.hbm [shape: f32[8,128], index: 5, kind: output, shape index: {}]  }
   0x1   :  { %11 = vsyncpa [#allocation6], 0 }
   0x2   :  { %12 = vsyncpa [#allocation4], 0  ;;  %s482_s18 = smov [#allocation5]   ;;  %s388_s22 = scalar_lea.hbm %s576_s1, 1024 }
   0x3   :  { %s28_s19 = sshll.u32 %s482_s18, 4  ;;  %p389_p0 = scmp.ne.s32.totalorder %s576_s1, %s388_s22  ;;  %s29_s19 = int_to_ptr.vmem [resolvable:$true] %s28_s19 }
   0x4   :  { %p392_p1 = scmp.lt.u32.totalorder %s388_s22, %s576_s1 }
   0x6   :  { %p394_p2 = pnand %p392_p1, %p389_p0 }
   0x8   :  { %397 = shalt.err (!%p394_p2)
}
   0x9   :  { %s398_s27 = scalar_lea.vmem %s29_s19, 1024  ;;  %p403_p4 = scmp.lt.s32.totalorder %s29_s19, %s29_s19 }
   0xa   :  { %p399_p3 = scmp.ne.s32.totalorder %s29_s19, %s398_s27  ;;  %p404_p5 = scmp.lt.s32.totalorder %s398_s27, %s398_s27 }
   0xc   :  { %p405_p6 = por %p404_p5, %p403_p4 }
   0xe   :  { %p406_p7 = pnand %p405_p6, %p399_p3 }
  0x10   :  { %409 = shalt.err (!%p406_p7)
}
  0x11   :  { %s483_s28 = smov 256   ;;  %s484_s29 = smov 16  }
  0x12   :  { %34 = dma.hbm_to_vmem [thread:$0]  %s576_s1, 1024, %s29_s19, [#allocation6], %s483_s28, %s483_s28, %s484_s29  }
  0x13   :  { %s485_s7 = smov [#allocation2]   ;;  %s486_s9 = smov [#allocation7]  }
  0x14   :  { %s19_s8 = sshll.u32 %s485_s7, 4  ;;  %s42_s10 = sshll.u32 %s486_s9, 4  ;;  %s20_s8 = int_to_ptr.vmem [resolvable:$true] %s19_s8  ;;  %s43_s10 = int_to_ptr.vmem [resolvable:$true] %s42_s10 }
  0x15   :  { %s410_s13 = scalar_lea.hbm %s575_s0, 128 }
  0x16   :  { %p411_p8 = scmp.ne.s32.totalorder %s575_s0, %s410_s13  ;;  %p414_p9 = scmp.lt.u32.totalorder %s410_s13, %s575_s0 }
  0x18   :  { %p416_p10 = pnand %p414_p9, %p411_p8 }
  0x1a   :  { %419 = shalt.err (!%p416_p10)
}
  0x1b   :  { %s420_s1 = scalar_lea.vmem %s20_s8, 128  ;;  %p425_p12 = scmp.lt.s32.totalorder %s20_s8, %s20_s8 }
  0x1c   :  { %p421_p11 = scmp.ne.s32.totalorder %s20_s8, %s420_s1  ;;  %p426_p13 = scmp.lt.s32.totalorder %s420_s1, %s420_s1 }
  0x1e   :  { %p427_p0 = por %p426_p13, %p425_p12 }
  0x20   :  { %p428_p1 = pnand %p427_p0, %p421_p11 }
  0x22   :  { %431 = shalt.err (!%p428_p1)
}
  0x23   :  { %22 = dma.hbm_to_vmem [thread:$0]  %s575_s0, 128, %s20_s8, [#allocation3]  }
  0x24   :  { %s432_s22 = scalar_lea.hbm %s578_s3, 4096 }
  0x25   :  { %p433_p2 = scmp.ne.s32.totalorder %s578_s3, %s432_s22  ;;  %p436_p3 = scmp.lt.u32.totalorder %s432_s22, %s578_s3 }
  0x27   :  { %p438_p4 = pnand %p436_p3, %p433_p2 }
  0x29   :  { %441 = shalt.err (!%p438_p4)
}
  0x2a   :  { %s442_s27 = scalar_lea.vmem %s43_s10, 4096  ;;  %p447_p6 = scmp.lt.s32.totalorder %s43_s10, %s43_s10 }
  0x2b   :  { %p443_p5 = scmp.ne.s32.totalorder %s43_s10, %s442_s27  ;;  %p448_p7 = scmp.lt.s32.totalorder %s442_s27, %s442_s27 }
  0x2d   :  { %p449_p8 = por %p448_p7, %p447_p6 }
  0x2f   :  { %p450_p9 = pnand %p449_p8, %p443_p5 }
  0x31   :  { %453 = shalt.err (!%p450_p9)
}
  0x32   :  { %s487_s0 = smov 128   ;;  %s488_s28 = smov 8  }
  0x33   :  { %48 = dma.hbm_to_vmem [thread:$0]  %s578_s3, 4096, %s43_s10, [#allocation6], %s487_s0, %s487_s0, %s488_s28  }
  0x34   :  { %476 = dma.done.wait [#allocation3], 128  }
  0x35   :  { %477 = vsyncadd [#allocation3], 4294967168 }
  0x36   :  { %478 = dma.done.wait [#allocation6], 5120  }
  0x37   :  { %479 = vsyncadd [#allocation6], 4294962176  ;;  %v489_v0 = vmov 0.0   ;;  %v62_v1 = vld [vmem:[#allocation5 + $0x8] sm:$0xff]  ;;  %v64_v2 = vld [vmem:[#allocation5 + $0x18] sm:$0xff]  ;;  %vm81_vm0 = vcmask 261120   ;;  %v71_v62 = vlaneseq }
  0x38   :  { %149 = vmatprep.mubr.f32.mxu0 %v489_v0  ;;  %v61_v3 = vld [vmem:[#allocation5] sm:$0xff]  ;;  %v339_v4 = vpack.c.bf16 %v64_v2, %v62_v1  ;;  %v63_v5 = vld [vmem:[#allocation5 + $0x10] sm:$0xff]  ;;  %v66_v6 = vld [vmem:[#allocation5 + $0x28] sm:$0xff]  ;;  %s490_s9 = smov [#allocation8]  }
  0x39   :  { %v68_v7 = vld [vmem:[#allocation5 + $0x38] sm:$0xff]  ;;  %v341_v8 = vpack.c.bf16 %v63_v5, %v61_v3  ;;  %v65_v10 = vld [vmem:[#allocation5 + $0x20] sm:$0xff]  ;;  %v67_v11 = vld [vmem:[#allocation5 + $0x30] sm:$0xff]  ;;  %v72_v63 = vshrl.u32 %v71_v62, 7 }
  0x3a   :  { %v343_v9 = vpack.c.bf16 %v68_v7, %v66_v6  ;;  %340 = vmatprep.subr.bf16.mxu0 %v339_v4  ;;  %v174_v12 = vld [vmem:[#allocation7 + $0x80] sm:$0xff]  ;;  %v175_v13 = vld [vmem:[#allocation7 + $0x88] sm:$0xff]  ;;  %v345_v15 = vpack.c.bf16 %v67_v11, %v65_v10  ;;  %v176_v18 = vld [vmem:[#allocation7 + $0x90] sm:$0xff] }
  0x3b   :  { %v158_v14 = vld [vmem:[#allocation7] sm:$0xff]  ;;  %342 = vmatpush1.bf16.msra.mxu0 %v341_v8  ;;  %v347_v16 = vpack.c.bf16 %v175_v13, %v174_v12  ;;  %v159_v17 = vld [vmem:[#allocation7 + $0x8] sm:$0xff]  ;;  %v177_v19 = vld [vmem:[#allocation7 + $0x98] sm:$0xff]  ;;  %v73_v0 = vsub.s32 0, %v72_v63  ;;  %v77_v2 = vsub.s32 1, %v72_v63 }
  0x3c   :  { %344 = vmatprep.subr.bf16.mxu0 %v343_v9  ;;  %v349_v20 = vpack.c.bf16 %v159_v17, %v158_v14  ;;  %v351_v21 = vpack.c.bf16 %v177_v19, %v176_v18  ;;  %v160_v22 = vld [vmem:[#allocation7 + $0x10] sm:$0xff]  ;;  %v161_v23 = vld [vmem:[#allocation7 + $0x18] sm:$0xff]  ;;  %v178_v24 = vld [vmem:[#allocation7 + $0xa0] sm:$0xff] }
  0x3d   :  { %348 = vmatprep.subr.bf16.mxu1 %v347_v16  ;;  %v179_v25 = vld [vmem:[#allocation7 + $0xa8] sm:$0xff]  ;;  %v353_v26 = vpack.c.bf16 %v161_v23, %v160_v22  ;;  %v60_v27 = vld [vmem:[#allocation2] sm:$0xff]  ;;  %v162_v29 = vld [vmem:[#allocation7 + $0x20] sm:$0xff] }
  0x3e   :  { %350 = vmatpush3.bf16.msra.mxu1 %v349_v20  ;;  %v355_v28 = vpack.c.bf16 %v179_v25, %v178_v24  ;;  %v163_v30 = vld [vmem:[#allocation7 + $0x28] sm:$0xff]  ;;  %v180_v31 = vld [vmem:[#allocation7 + $0xb0] sm:$0xff]  ;;  %v181_v32 = vld [vmem:[#allocation7 + $0xb8] sm:$0xff] }
  0x3f   :  { %346 = vmatpush1.bf16.msra.mxu0 %v345_v15  ;;  %352 = vmatprep.subr.bf16.mxu1 %v351_v21  ;;  %v357_v33 = vpack.c.bf16 %v163_v30, %v162_v29  ;;  %v359_v34 = vpack.c.bf16 %v181_v32, %v180_v31  ;;  %v164_v35 = vld [vmem:[#allocation7 + $0x30] sm:$0xff]  ;;  %v165_v36 = vld [vmem:[#allocation7 + $0x38] sm:$0xff]  ;;  %v182_v37 = vld [vmem:[#allocation7 + $0xc0] sm:$0xff] }
  0x40   :  { %v183_v38 = vld [vmem:[#allocation7 + $0xc8] sm:$0xff]  ;;  %v361_v39 = vpack.c.bf16 %v165_v36, %v164_v35  ;;  %v166_v41 = vld [vmem:[#allocation7 + $0x40] sm:$0xff]  ;;  %v184_v43 = vld [vmem:[#allocation7 + $0xd0] sm:$0xff] }
  0x41   :  { %v363_v40 = vpack.c.bf16 %v183_v38, %v182_v37  ;;  %v167_v42 = vld [vmem:[#allocation7 + $0x48] sm:$0xff]  ;;  %v185_v44 = vld [vmem:[#allocation7 + $0xd8] sm:$0xff]  ;;  %v168_v47 = vld [vmem:[#allocation7 + $0x50] sm:$0xff] }
  0x42   :  { %302 = vmatmul.mubr.msk.f32.vlgmr.msra.gmra.mrb[0].mxu0 %vm81_vm0, %v60_v27  ;;  %354 = vmatpush3.bf16.msra.mxu1 %v353_v26  ;;  %v365_v45 = vpack.c.bf16 %v167_v42, %v166_v41  ;;  %v367_v46 = vpack.c.bf16 %v185_v44, %v184_v43  ;;  %v169_v48 = vld [vmem:[#allocation7 + $0x58] sm:$0xff]  ;;  %v186_v49 = vld [vmem:[#allocation7 + $0xe0] sm:$0xff]  ;;  %v187_v50 = vld [vmem:[#allocation7 + $0xe8] sm:$0xff] }
  0x43   :  { %356 = vmatprep.subr.bf16.mxu1 %v355_v28  ;;  %v369_v51 = vpack.c.bf16 %v169_v48, %v168_v47  ;;  %v371_v52 = vpack.c.bf16 %v187_v50, %v186_v49  ;;  %v170_v53 = vld [vmem:[#allocation7 + $0x60] sm:$0xff]  ;;  %v171_v54 = vld [vmem:[#allocation7 + $0x68] sm:$0xff]  ;;  %v188_v56 = vld [vmem:[#allocation7 + $0xf0] sm:$0xff] }
  0x44   :  { %v373_v55 = vpack.c.bf16 %v171_v54, %v170_v53  ;;  %v189_v57 = vld [vmem:[#allocation7 + $0xf8] sm:$0xff]  ;;  %v172_v59 = vld [vmem:[#allocation7 + $0x70] sm:$0xff] }
  0x45   :  { %v375_v58 = vpack.c.bf16 %v189_v57, %v188_v56  ;;  %v173_v60 = vld [vmem:[#allocation7 + $0x78] sm:$0xff] }
  0x46   :  { %358 = vmatpush3.bf16.msra.mxu1 %v357_v33  ;;  %v377_v61 = vpack.c.bf16 %v173_v60, %v172_v59  ;;  %v69_v1 = vld [vmem:[%s577_s2] sm:$0x3]  ;;  %s292_s2 = sshll.u32 %s490_s9, 4  ;;  %s293_s2 = int_to_ptr.vmem [resolvable:$true] %s292_s2 }
  0x47   :  { %360 = vmatprep.subr.bf16.mxu1 %v359_v34  ;;  %v74_v3 = vrot.slane %v69_v1, %v73_v0  ;;  %v78_v4 = vrot.slane %v69_v1, %v77_v2  ;;  %v303_v14 = vld [vmem:[%s579_s4] ss:$0 sm:$0xff]  ;;  %s454_s10 = scalar_lea.vmem %s293_s2, 128  ;;  %p459_p11 = scmp.lt.s32.totalorder %s293_s2, %s293_s2 }
  0x48   :  { %p455_p10 = scmp.ne.s32.totalorder %s293_s2, %s454_s10  ;;  %p460_p12 = scmp.lt.s32.totalorder %s454_s10, %s454_s10 }
  0x4a   :  { %362 = vmatpush3.bf16.msra.mxu1 %v361_v39  ;;  %p461_p13 = por %p460_p12, %p459_p11 }
  0x4b   :  { %364 = vmatprep.subr.bf16.mxu1 %v363_v40 }
  0x4c   :  { %p462_p0 = pnand %p461_p13, %p455_p10 }
  0x4e   :  { %366 = vmatpush3.bf16.msra.mxu1 %v365_v45 }
  0x4f   :  { %368 = vmatprep.subr.bf16.mxu1 %v367_v46 }
  0x52   :  { %370 = vmatpush3.bf16.msra.mxu1 %v369_v51 }
  0x53   :  { %372 = vmatprep.subr.bf16.mxu1 %v371_v52 }
  0x56   :  { %374 = vmatpush3.bf16.msra.mxu1 %v373_v55 }
  0x57   :  { %376 = vmatprep.subr.bf16.mxu1 %v375_v58 }
  0x5a   :  { %378 = vmatpush3.bf16.msra.mxu1 %v377_v61 }
 0x115   :  { %v151_v5 = vpop.f32.mrb[0].mxu0 }
 0x116   :  { %v152_v6 = vadd.f32 %v151_v5, %v74_v3  ;;  %v153_v7 = vpop.f32.mrb[1].mxu0 }
 0x117   :  { %v154_v8 = vadd.f32 %v153_v7, %v78_v4 }
 0x118   :  { %v156_v10 = vmax.f32 %v152_v6, 0.0 }
 0x119   :  { %v157_v9 = vmax.f32 %v154_v8, 0.0 }
 0x11b   :  { %254 = vmatprep.mubr.f32.mxu1 %v157_v9 }
 0x11c   :  { %255 = vmatmul.mubr.f32.vlgmr.msra.gmra.mrb[0].mxu1 %v156_v10 }
 0x1ef   :  { %v336_v11 = vpop.f32.mrb[0].mxu1 }
 0x1f0   :  { %v337_v12 = vpop.f32.mrb[1].mxu1 }
 0x1f1   :  { %v338_v13 = vadd.f32 %v337_v12, %v336_v11 }
 0x1f3   :  { %v276_v15 = vmul.f32 0.25, %v338_v13 }
 0x1f5   :  { %v284_v16 = vadd.f32 %v303_v14, %v276_v15 }
 0x1f7   :  { %285 = vst [vmem:[#allocation8] sm:$0xff] %v284_v16 }
 0x1f8   :  { %465 = shalt.err (!%p462_p0)
}
 0x1f9   :  { %s466_s13 = scalar_lea.hbm %s580_s5, 128 }
 0x1fa   :  { %p467_p1 = scmp.ne.s32.totalorder %s580_s5, %s466_s13  ;;  %p470_p2 = scmp.lt.u32.totalorder %s466_s13, %s580_s5 }
 0x1fc   :  { %p472_p3 = pnand %p470_p2, %p467_p1 }
 0x1fe   :  { %475 = shalt.err (!%p472_p3)
}
 0x1ff   :  { %295 = dma.vmem_to_hbm [thread:$0]  %s293_s2, 128, %s580_s5, [#allocation4]  }
 0x200   :  { %480 = dma.done.wait [#allocation4], 128  }
 0x201   :  { %481 = vsyncadd [#allocation4], 4294967168 }
 0x202   :  { %299 = vsyncpa [#allocation3], 1 }
 0x203   :  { %300 = vsyncpa [#allocation6], 1 }
 0x204   :  { %301 = vsyncpa [#allocation4], 1 }

</bundles_post_ra>
